<compile_context>
chip_gen: v5e
topology: v5e:2x2
jax: 0.10.0
libtpu: 0.0.40
codegen_flags: <defaults>
</compile_context>

<pallas_src>
import math
import jax
import jax.numpy as jnp
from jax.experimental import pallas as pl
from jax.experimental.pallas import tpu as pltpu


HIDDEN = 256
_VMEM_BUDGET = 32 * 1024 * 1024  # explicit scoped-VMEM budget (safe on v7x)


def _round_up(x, m):
    return ((x + m - 1) // m) * m


def _mlp_kernel(x_ref, w1_ref, b1_ref, w2_ref, b2_ref, w3_ref, b3_ref, o_ref):
    # Layer 1: Linear (MXU, f32 accumulation) + bias + ReLU in f32 (VPU).
    h = jnp.dot(x_ref[...], w1_ref[...], preferred_element_type=jnp.float32)
    h = jnp.maximum(h + b1_ref[...], 0.0)
    # Feed the next matmul at weight precision (bf16 fast path on v6e/v7x,
    # no-op in f32 mode); accumulation stays f32.
    h = h.astype(w2_ref.dtype)
    # Layer 2: Linear + bias + ReLU.
    h = jnp.dot(h, w2_ref[...], preferred_element_type=jnp.float32)
    h = jnp.maximum(h + b2_ref[...], 0.0)
    h = h.astype(w3_ref.dtype)
    # Head: Linear (no activation); output last dim is lane-padded to 128.
    out = jnp.dot(h, w3_ref[...], preferred_element_type=jnp.float32)
    o_ref[...] = (out + b3_ref[...]).astype(o_ref.dtype)


def _pick_tile_b(b_pad, max_tile_b, d_pad, p_pad, h, cd_bytes, out_bytes):
    """Largest 128-multiple batch tile whose double-buffered footprint fits VMEM."""
    # Weights + biases (resident, but Pallas double-buffers inputs by default).
    w_bytes = 2 * (d_pad * h + h * h + h * p_pad) * cd_bytes
    w_bytes += 2 * (2 * h + p_pad) * 4  # f32 biases
    tile = min(b_pad, max_tile_b)
    tile = _round_up(tile, 128)
    while tile > 128:
        per_tile = 2 * tile * d_pad * cd_bytes + 2 * tile * p_pad * out_bytes
        per_tile += tile * h * 4  # in-kernel f32 intermediate (worst case)
        if w_bytes + per_tile <= _VMEM_BUDGET:
            break
        tile -= 128
    return max(tile, 128)


def proto_classifier_forward(x, params, *, compute_dtype=None, max_tile_b=512):
    """Forward pass of ProtoClassifier.

    x: (B, input_dim) or (lead, B, input_dim). Matches the torch module, which
       squeezes dim 0 of the output when the input is 3-D (and dim 0 == 1).
    params: dict with w1 (D,H), b1 (H,), w2 (H,H), b2 (H,), w3 (H,P), b3 (P,)
    compute_dtype: optional dtype for x / weights on the MXU (e.g. jnp.bfloat16
       on v6e/v7x). Accumulation and bias/ReLU math stay f32; output keeps x's
       original dtype.
    """
    orig_dtype = x.dtype
    was_3d = (x.ndim == 3)
    if was_3d:
        lead = x.shape[0]
        x2 = x.reshape(lead * x.shape[1], x.shape[-1])
    else:
        x2 = x

    B, D = x2.shape
    H = params["w1"].shape[1]
    P = params["w3"].shape[1]

    # Lane-pad the contraction dim (D) and the head output dim (P) to a full
    # 128-lane width: full-width MXU contraction and unmasked lane-dense stores.
    D_pad = _round_up(D, 128)
    P_pad = _round_up(P, 128)

    cd = jnp.dtype(compute_dtype) if compute_dtype is not None else jnp.dtype(orig_dtype)
    cd_bytes = cd.itemsize
    out_bytes = jnp.dtype(orig_dtype).itemsize

    # 128-aligned batch tiles (MXU M-occupancy), shrunk if the VMEM footprint
    # (double-buffered x tiles + resident weights) would blow the budget.
    B_pad = _round_up(max(B, 1), 128)
    tile_b = _pick_tile_b(B_pad, max_tile_b, D_pad, P_pad, H, cd_bytes, out_bytes)
    B_pad = _round_up(B_pad, tile_b)

    # Zero-padded operands (zeros contribute nothing to the matmuls).
    x_p = jnp.zeros((B_pad, D_pad), cd).at[:B, :D].set(x2.astype(cd))
    w1 = jnp.zeros((D_pad, H), cd).at[:D, :].set(params["w1"].astype(cd))
    w2 = params["w2"].astype(cd)
    w3 = jnp.zeros((H, P_pad), cd).at[:, :P].set(params["w3"].astype(cd))
    # Biases stay f32 (added after f32 accumulation; f32 VPU path on all chips).
    b1 = params["b1"].astype(jnp.float32).reshape(1, H)
    b2 = params["b2"].astype(jnp.float32).reshape(1, H)
    b3 = jnp.zeros((1, P_pad), jnp.float32).at[0, :P].set(
        params["b3"].astype(jnp.float32))

    grid = (B_pad // tile_b,)

    flops = 2 * B_pad * (D_pad * H + H * H + H * P_pad)
    bytes_accessed = (
        B_pad * D_pad * cd_bytes
        + (D_pad * H + H * H + H * P_pad) * cd_bytes
        + (2 * H + P_pad) * 4
        + B_pad * P_pad * out_bytes
    )

    out = pl.pallas_call(
        _mlp_kernel,
        out_shape=jax.ShapeDtypeStruct((B_pad, P_pad), orig_dtype),
        grid_spec=pltpu.PrefetchScalarGridSpec(
            num_scalar_prefetch=0,
            grid=grid,
            in_specs=[
                pl.BlockSpec((tile_b, D_pad), lambda i: (i, 0)),  # x tile
                pl.BlockSpec((D_pad, H), lambda i: (0, 0)),       # w1 (resident)
                pl.BlockSpec((1, H), lambda i: (0, 0)),           # b1
                pl.BlockSpec((H, H), lambda i: (0, 0)),           # w2
                pl.BlockSpec((1, H), lambda i: (0, 0)),           # b2
                pl.BlockSpec((H, P_pad), lambda i: (0, 0)),       # w3
                pl.BlockSpec((1, P_pad), lambda i: (0, 0)),       # b3
            ],
            out_specs=pl.BlockSpec((tile_b, P_pad), lambda i: (i, 0)),
        ),
        compiler_params=pltpu.CompilerParams(
            dimension_semantics=("parallel",),
            vmem_limit_bytes=_VMEM_BUDGET,
        ),
        cost_estimate=pl.CostEstimate(
            flops=flops, transcendentals=0, bytes_accessed=bytes_accessed),
    )(x_p, w1, b1, w2, b2, w3, b3)

    out = out[:B, :P]
    if was_3d:
        out = out.reshape(lead, B // lead, P)
        if lead == 1:          # torch: x.squeeze(0) only removes dim 0 if it is 1
            out = out[0]
    return out


def init_params(key, input_dim, proto_count, hidden=HIDDEN, dtype=jnp.float32):
    """Deterministic init mimicking torch.nn.Linear default U(-1/sqrt(fan_in), +)."""
    def linear(k, fan_in, fan_out):
        kw, kb = jax.random.split(k)
        bound = 1.0 / math.sqrt(fan_in)
        w = jax.random.uniform(kw, (fan_in, fan_out), dtype, -bound, bound)
        b = jax.random.uniform(kb, (fan_out,), dtype, -bound, bound)
        return w, b

    k1, k2, k3 = jax.random.split(key, 3)
    w1, b1 = linear(k1, input_dim, hidden)
    w2, b2 = linear(k2, hidden, hidden)
    w3, b3 = linear(k3, hidden, proto_count)
    return {"w1": w1, "b1": b1, "w2": w2, "b2": b2, "w3": w3, "b3": b3}


def reference_forward(x, p):
    """Pure-JAX reference for correctness check."""
    h = jnp.maximum(x @ p["w1"] + p["b1"], 0.0)
    h = jnp.maximum(h @ p["w2"] + p["b2"], 0.0)
    out = h @ p["w3"] + p["b3"]
    if out.ndim == 3 and out.shape[0] == 1:
        out = out[0]
    return out


# TODO(synk): remove_proto / add_proto are host-side parameter surgery (resizing
# the head); they are not kernel ops — rebuild params["w3"]/["b3"] outside.


if __name__ == "__main__":
    # ProtoClassifier(input_dim=32, output_dim=2, proto_count_per_dim=4)
    #   -> proto_count = 4 ** 2 = 16
    input_dim = 32
    output_dim = 2
    proto_count_per_dim = 4
    proto_count = proto_count_per_dim ** output_dim
    batch = 8

    key = jax.random.PRNGKey(0)
    kx, kp = jax.random.split(key)
    x = jax.random.normal(kx, (batch, input_dim), dtype=jnp.float32)
    params = init_params(kp, input_dim, proto_count)

    ref = reference_forward(x, params)

    # f32 path
    out = jax.block_until_ready(proto_classifier_forward(x, params))
    assert out.shape == (batch, proto_count), out.shape
    assert jnp.allclose(out, ref, atol=1e-4, rtol=1e-4), "f32 mismatch vs reference"

    # bf16 MXU fast path (v6e/v7x): f32 accumulation, looser tolerance.
    out_bf16 = jax.block_until_ready(
        proto_classifier_forward(x, params, compute_dtype=jnp.bfloat16))
    assert out_bf16.shape == (batch, proto_count), out_bf16.shape
    assert jnp.allclose(out_bf16, ref, atol=5e-2, rtol=5e-2), "bf16 mismatch vs reference"

    # 3-D input path (torch squeezes dim 0 of the output when it equals 1).
    out3 = jax.block_until_ready(proto_classifier_forward(x[None], params))
    assert out3.shape == (batch, proto_count), out3.shape
    assert jnp.allclose(out3, ref, atol=1e-4, rtol=1e-4), "3-D path mismatch"

    print("KERNEL_OK")
</pallas_src>

<mosaic_0001>
module attributes {stable_mosaic.version = 11 : i64} {
  func.func @_mlp_kernel(%arg0: i32, %arg1: memref<128x128xf32, #tpu.memory_space<vmem>>, %arg2: memref<128x256xf32, #tpu.memory_space<vmem>>, %arg3: memref<1x256xf32, #tpu.memory_space<vmem>>, %arg4: memref<256x256xf32, #tpu.memory_space<vmem>>, %arg5: memref<1x256xf32, #tpu.memory_space<vmem>>, %arg6: memref<256x128xf32, #tpu.memory_space<vmem>>, %arg7: memref<1x128xf32, #tpu.memory_space<vmem>>, %arg8: memref<128x128xf32, #tpu.memory_space<vmem>>) attributes {dimension_semantics = [#tpu.dimension_semantics<parallel>], iteration_bounds = array<i64: 1>, scalar_prefetch = 0 : i64, scratch_operands = 0 : i64, tpu.core_type = #tpu.core_type<tc>, window_params = [{transform_indices = @transform_0, window_bounds = array<i64: 128, 128>}, {pipeline_mode = #tpu.pipeline_mode<synchronous>, transform_indices = @transform_1, window_bounds = array<i64: 128, 256>}, {pipeline_mode = #tpu.pipeline_mode<synchronous>, transform_indices = @transform_2, window_bounds = array<i64: 1, 256>}, {pipeline_mode = #tpu.pipeline_mode<synchronous>, transform_indices = @transform_3, window_bounds = array<i64: 256, 256>}, {pipeline_mode = #tpu.pipeline_mode<synchronous>, transform_indices = @transform_4, window_bounds = array<i64: 1, 256>}, {pipeline_mode = #tpu.pipeline_mode<synchronous>, transform_indices = @transform_5, window_bounds = array<i64: 256, 128>}, {pipeline_mode = #tpu.pipeline_mode<synchronous>, transform_indices = @transform_6, window_bounds = array<i64: 1, 128>}, {transform_indices = @transform_7, window_bounds = array<i64: 128, 128>}]} {
    %c0 = arith.constant 0 : index
    %c0_0 = arith.constant 0 : index
    %0 = vector.load %arg1[%c0, %c0_0] : memref<128x128xf32, #tpu.memory_space<vmem>>, vector<128x128xf32>
    %c0_1 = arith.constant 0 : index
    %c0_2 = arith.constant 0 : index
    %1 = vector.load %arg2[%c0_1, %c0_2] : memref<128x256xf32, #tpu.memory_space<vmem>>, vector<128x256xf32>
    %cst = arith.constant dense<0.000000e+00> : vector<128x256xf32>
    %2 = tpu.matmul %0, %1, %cst {dimension_numbers = #tpu.dot_dimension_numbers<[1], [0], [0], [1], [0, 0, 1, 1], [], []>} : vector<128x128xf32>, vector<128x256xf32>, vector<128x256xf32> -> vector<128x256xf32>
    %c0_3 = arith.constant 0 : index
    %c0_4 = arith.constant 0 : index
    %3 = vector.load %arg3[%c0_3, %c0_4] : memref<1x256xf32, #tpu.memory_space<vmem>>, vector<1x256xf32>
    %4 = vector.broadcast %3 : vector<1x256xf32> to vector<128x256xf32>
    %5 = arith.addf %2, %4 : vector<128x256xf32>
    %cst_5 = arith.constant 0.000000e+00 : f32
    %6 = vector.broadcast %cst_5 : f32 to vector<128x256xf32>
    %7 = arith.maximumf %5, %6 : vector<128x256xf32>
    %c0_6 = arith.constant 0 : index
    %c0_7 = arith.constant 0 : index
    %8 = vector.load %arg4[%c0_6, %c0_7] : memref<256x256xf32, #tpu.memory_space<vmem>>, vector<256x256xf32>
    %cst_8 = arith.constant dense<0.000000e+00> : vector<128x256xf32>
    %9 = tpu.matmul %7, %8, %cst_8 {dimension_numbers = #tpu.dot_dimension_numbers<[1], [0], [0], [1], [0, 0, 1, 1], [], []>} : vector<128x256xf32>, vector<256x256xf32>, vector<128x256xf32> -> vector<128x256xf32>
    %c0_9 = arith.constant 0 : index
    %c0_10 = arith.constant 0 : index
    %10 = vector.load %arg5[%c0_9, %c0_10] : memref<1x256xf32, #tpu.memory_space<vmem>>, vector<1x256xf32>
    %11 = vector.broadcast %10 : vector<1x256xf32> to vector<128x256xf32>
    %12 = arith.addf %9, %11 : vector<128x256xf32>
    %cst_11 = arith.constant 0.000000e+00 : f32
    %13 = vector.broadcast %cst_11 : f32 to vector<128x256xf32>
    %14 = arith.maximumf %12, %13 : vector<128x256xf32>
    %c0_12 = arith.constant 0 : index
    %c0_13 = arith.constant 0 : index
    %15 = vector.load %arg6[%c0_12, %c0_13] : memref<256x128xf32, #tpu.memory_space<vmem>>, vector<256x128xf32>
    %cst_14 = arith.constant dense<0.000000e+00> : vector<128x128xf32>
    %16 = tpu.matmul %14, %15, %cst_14 {dimension_numbers = #tpu.dot_dimension_numbers<[1], [0], [0], [1], [0, 0, 1, 1], [], []>} : vector<128x256xf32>, vector<256x128xf32>, vector<128x128xf32> -> vector<128x128xf32>
    %c0_15 = arith.constant 0 : index
    %c0_16 = arith.constant 0 : index
    %17 = vector.load %arg7[%c0_15, %c0_16] : memref<1x128xf32, #tpu.memory_space<vmem>>, vector<1x128xf32>
    %18 = vector.broadcast %17 : vector<1x128xf32> to vector<128x128xf32>
    %19 = arith.addf %16, %18 : vector<128x128xf32>
    %c0_17 = arith.constant 0 : index
    %c0_18 = arith.constant 0 : index
    %20 = vector.load %arg8[%c0_17, %c0_18] : memref<128x128xf32, #tpu.memory_space<vmem>>, vector<128x128xf32>
    tpu.vector_store %arg8[%c0_17, %c0_18], %19 {strides = array<i32>} : memref<128x128xf32, #tpu.memory_space<vmem>>, vector<128x128xf32>,
    return
  }
  func.func @transform_0(%arg0: i32) -> (i32, i32) {
    %c0_i32 = arith.constant 0 : i32
    %c0_i32_0 = arith.constant 0 : i32
    return %arg0, %c0_i32 : i32, i32
  }
  func.func @transform_1(%arg0: i32) -> (i32, i32) {
    %c0_i32 = arith.constant 0 : i32
    %c0_i32_0 = arith.constant 0 : i32
    %c0_i32_1 = arith.constant 0 : i32
    return %c0_i32, %c0_i32_0 : i32, i32
  }
  func.func @transform_2(%arg0: i32) -> (i32, i32) {
    %c0_i32 = arith.constant 0 : i32
    %c0_i32_0 = arith.constant 0 : i32
    %c0_i32_1 = arith.constant 0 : i32
    return %c0_i32, %c0_i32_0 : i32, i32
  }
  func.func @transform_3(%arg0: i32) -> (i32, i32) {
    %c0_i32 = arith.constant 0 : i32
    %c0_i32_0 = arith.constant 0 : i32
    %c0_i32_1 = arith.constant 0 : i32
    return %c0_i32, %c0_i32_0 : i32, i32
  }
  func.func @transform_4(%arg0: i32) -> (i32, i32) {
    %c0_i32 = arith.constant 0 : i32
    %c0_i32_0 = arith.constant 0 : i32
    %c0_i32_1 = arith.constant 0 : i32
    return %c0_i32, %c0_i32_0 : i32, i32
  }
  func.func @transform_5(%arg0: i32) -> (i32, i32) {
    %c0_i32 = arith.constant 0 : i32
    %c0_i32_0 = arith.constant 0 : i32
    %c0_i32_1 = arith.constant 0 : i32
    return %c0_i32, %c0_i32_0 : i32, i32
  }
  func.func @transform_6(%arg0: i32) -> (i32, i32) {
    %c0_i32 = arith.constant 0 : i32
    %c0_i32_0 = arith.constant 0 : i32
    %c0_i32_1 = arith.constant 0 : i32
    return %c0_i32, %c0_i32_0 : i32, i32
  }
  func.func @transform_7(%arg0: i32) -> (i32, i32) {
    %c0_i32 = arith.constant 0 : i32
    %c0_i32_0 = arith.constant 0 : i32
    return %arg0, %c0_i32 : i32, i32
  }
}

</mosaic_0001>

<bundles_post_ra>
// kernel: tpu_custom_call.1
= control target key start
LH: loop header
LB: loop body
LE: loop exit
PB: predicated region body
PF: predicated region fallthrough
CT: control target
= control target key end

     0   :  { %12 = vsyncpa [#allocation3], 0  ;;  %s1220_s0 = inlined_call_operand.hbm [shape: f32[128,128], index: 0, kind: input, shape index: {}]   ;;  %s1221_s1 = inlined_call_operand.hbm [shape: f32[128,256], index: 1, kind: input, shape index: {}]   ;;  %s1222_s2 = inlined_call_operand.hbm [shape: f32[1,256], index: 2, kind: input, shape index: {}]   ;;  %s1223_s3 = inlined_call_operand.hbm [shape: f32[256,256], index: 3, kind: input, shape index: {}]   ;;  %s1224_s4 = inlined_call_operand.vmem [shape: f32[1,256], index: 4, kind: input, shape index: {}]   ;;  %s1225_s5 = inlined_call_operand.hbm [shape: f32[256,128], index: 5, kind: input, shape index: {}]   ;;  %s1226_s6 = inlined_call_operand.vmem [shape: f32[1,128], index: 6, kind: input, shape index: {}]   ;;  %s1227_s7 = inlined_call_operand.hbm [shape: f32[128,128], index: 7, kind: output, shape index: {}]  }
   0x1   :  { %13 = vsyncpa [#allocation6], 0 }
   0x2   :  { %14 = vsyncpa [#allocation9], 0  ;;  %s33_s26 = sshll.u32 %s1221_s1, 4  ;;  %s34_s26 = int_to_ptr.hbm [resolvable:$true] %s33_s26 }
   0x3   :  { %15 = vsyncpa [#allocation4], 0  ;;  %s1047_s27 = smov [#allocation5]   ;;  %s57_s8 = sshll.u32 %s1223_s3, 4  ;;  %s58_s8 = int_to_ptr.hbm [resolvable:$true] %s57_s8 }
   0x4   :  { %s35_s28 = sshll.u32 %s1047_s27, 4  ;;  %s1048_s9 = smov 256   ;;  %s36_s28 = int_to_ptr.vmem [resolvable:$true] %s35_s28 }
   0x5   :  { %s1049_s10 = smov 16   ;;  %s1050_s11 = smov [#allocation8]  }
   0x6   :  { %41 = dma.hbm_to_vmem [thread:$0]  %s34_s26, 4096, %s36_s28, [#allocation6], %s1048_s9, %s1048_s9, %s1049_s10  }
   0x7   :  { %s59_s12 = sshll.u32 %s1050_s11, 4  ;;  %s20_s15 = sshll.u32 %s1220_s0, 4  ;;  %s60_s12 = int_to_ptr.vmem [resolvable:$true] %s59_s12  ;;  %s21_s15 = int_to_ptr.hbm [resolvable:$true] %s20_s15 }
   0x8   :  { %65 = dma.hbm_to_vmem [thread:$0]  %s58_s8, 8192, %s60_s12, [#allocation9], %s1048_s9, %s1048_s9, %s1049_s10  }
   0x9   :  { %s1051_s1 = smov [#allocation2]   ;;  %s47_s3 = sshll.u32 %s1222_s2, 4  ;;  %s48_s3 = int_to_ptr.hbm [resolvable:$true] %s47_s3 }
   0xa   :  { %s22_s16 = sshll.u32 %s1051_s1, 4  ;;  %s1052_s19 = smov 128   ;;  %s23_s16 = int_to_ptr.vmem [resolvable:$true] %s22_s16 }
   0xb   :  { %s1053_s20 = smov 8   ;;  %s1054_s21 = smov [#allocation7]  }
   0xc   :  { %28 = dma.hbm_to_vmem [thread:$0]  %s21_s15, 2048, %s23_s16, [#allocation3], %s1052_s19, %s1052_s19, %s1053_s20  }
   0xd   :  { %s49_s22 = sshll.u32 %s1054_s21, 4  ;;  %s72_s24 = sshll.u32 %s1225_s5, 4  ;;  %s50_s22 = int_to_ptr.vmem [resolvable:$true] %s49_s22  ;;  %s73_s24 = int_to_ptr.hbm [resolvable:$true] %s72_s24 }
   0xe   :  { %52 = dma.hbm_to_vmem [thread:$0]  %s48_s3, 32, %s50_s22, [#allocation6]  }
   0xf   :  { %s1055_s25 = smov [#allocation10]  }
  0x10   :  { %s74_s26 = sshll.u32 %s1055_s25, 4  ;;  %s75_s26 = int_to_ptr.vmem [resolvable:$true] %s74_s26 }
  0x11   :  { %80 = dma.hbm_to_vmem [thread:$0]  %s73_s24, 4096, %s75_s26, [#allocation9], %s1052_s19, %s1052_s19, %s1053_s20  }
  0x12   :  { %1039 = dma.done.wait [#allocation3], 2048  }
  0x13   :  { %1040 = vsyncadd [#allocation3], 4294965248 }
  0x14   :  { %1041 = dma.done.wait [#allocation6], 4128  }
  0x15   :  { %1042 = vsyncadd [#allocation6], 4294963168 }
  0x16   :  { %1043 = dma.done.wait [#allocation9], 12288  }
  0x17   :  { %1044 = vsyncadd [#allocation9], 4294955008  ;;  %v149_v0 = vld [vmem:[#allocation5 + $0xf0] sm:$0xff]  ;;  %v147_v1 = vld [vmem:[#allocation5 + $0xe0] sm:$0xff]  ;;  %s869_s8 = sshll.u32 %s1227_s7, 4  ;;  %s870_s8 = int_to_ptr.hbm [resolvable:$true] %s869_s8 }
  0x18   :  { %v150_v2 = vld [vmem:[#allocation5 + $0xf8] sm:$0xff]  ;;  %157 = vmatpush.msra.mxu0 %v149_v0  ;;  %v148_v3 = vld [vmem:[#allocation5 + $0xe8] sm:$0xff]  ;;  %v145_v4 = vld [vmem:[#allocation5 + $0xd0] sm:$0xff] }
  0x19   :  { %222 = vmatpush.msra.mxu1 %v150_v2  ;;  %v146_v5 = vld [vmem:[#allocation5 + $0xd8] sm:$0xff]  ;;  %v143_v6 = vld [vmem:[#allocation5 + $0xc0] sm:$0xff]  ;;  %v144_v7 = vld [vmem:[#allocation5 + $0xc8] sm:$0xff] }
  0x1a   :  { %158 = vmatpush.msra.mxu0 %v147_v1  ;;  %v141_v8 = vld [vmem:[#allocation5 + $0xb0] sm:$0xff]  ;;  %v142_v9 = vld [vmem:[#allocation5 + $0xb8] sm:$0xff]  ;;  %v139_v10 = vld [vmem:[#allocation5 + $0xa0] sm:$0xff] }
  0x1b   :  { %223 = vmatpush.msra.mxu1 %v148_v3  ;;  %v140_v11 = vld [vmem:[#allocation5 + $0xa8] sm:$0xff]  ;;  %v137_v12 = vld [vmem:[#allocation5 + $0x90] sm:$0xff]  ;;  %v138_v13 = vld [vmem:[#allocation5 + $0x98] sm:$0xff] }
  0x1c   :  { %159 = vmatpush.msra.mxu0 %v145_v4  ;;  %v135_v14 = vld [vmem:[#allocation5 + $0x80] sm:$0xff]  ;;  %v136_v15 = vld [vmem:[#allocation5 + $0x88] sm:$0xff]  ;;  %v133_v16 = vld [vmem:[#allocation5 + $0x70] sm:$0xff] }
  0x1d   :  { %224 = vmatpush.msra.mxu1 %v146_v5  ;;  %v134_v17 = vld [vmem:[#allocation5 + $0x78] sm:$0xff]  ;;  %v131_v18 = vld [vmem:[#allocation5 + $0x60] sm:$0xff]  ;;  %v132_v19 = vld [vmem:[#allocation5 + $0x68] sm:$0xff] }
  0x1e   :  { %160 = vmatpush.msra.mxu0 %v143_v6  ;;  %v129_v20 = vld [vmem:[#allocation5 + $0x50] sm:$0xff]  ;;  %v130_v21 = vld [vmem:[#allocation5 + $0x58] sm:$0xff]  ;;  %v127_v22 = vld [vmem:[#allocation5 + $0x40] sm:$0xff] }
  0x1f   :  { %225 = vmatpush.msra.mxu1 %v144_v7  ;;  %v128_v23 = vld [vmem:[#allocation5 + $0x48] sm:$0xff]  ;;  %v125_v24 = vld [vmem:[#allocation5 + $0x30] sm:$0xff]  ;;  %v126_v25 = vld [vmem:[#allocation5 + $0x38] sm:$0xff] }
  0x20   :  { %161 = vmatpush.msra.mxu0 %v141_v8  ;;  %v123_v26 = vld [vmem:[#allocation5 + $0x20] sm:$0xff]  ;;  %v124_v27 = vld [vmem:[#allocation5 + $0x28] sm:$0xff]  ;;  %v121_v28 = vld [vmem:[#allocation5 + $0x10] sm:$0xff] }
  0x21   :  { %226 = vmatpush.msra.mxu1 %v142_v9  ;;  %v122_v29 = vld [vmem:[#allocation5 + $0x18] sm:$0xff]  ;;  %v119_v30 = vld [vmem:[#allocation5] sm:$0xff]  ;;  %v120_v31 = vld [vmem:[#allocation5 + $0x8] sm:$0xff] }
  0x22   :  { %162 = vmatpush.msra.mxu0 %v139_v10  ;;  %v103_v32 = vld [vmem:[#allocation2] sm:$0xff]  ;;  %v348_v35 = vld [vmem:[#allocation8 + $0xe8] sm:$0xff]  ;;  %v106_v47 = vld [vmem:[#allocation2 + $0x18] sm:$0xff] }
  0x23   :  { %227 = vmatpush.msra.mxu1 %v140_v11  ;;  %v350_v33 = vld [vmem:[#allocation8 + $0xf8] sm:$0xff]  ;;  %v380_v36 = vld [vmem:[#allocation8 + $0x1e8] sm:$0xff]  ;;  %v349_v0 = vld [vmem:[#allocation8 + $0xf0] sm:$0xff] }
  0x24   :  { %163 = vmatpush.msra.mxu0 %v137_v12  ;;  %v382_v34 = vld [vmem:[#allocation8 + $0x1f8] sm:$0xff]  ;;  %v344_v39 = vld [vmem:[#allocation8 + $0xc8] sm:$0xff]  ;;  %389 = vmatpush.msra.mxu2 %v349_v0  ;;  %v347_v2 = vld [vmem:[#allocation8 + $0xe0] sm:$0xff] }
  0x25   :  { %228 = vmatpush.msra.mxu1 %v138_v13  ;;  %v346_v37 = vld [vmem:[#allocation8 + $0xd8] sm:$0xff]  ;;  %v376_v40 = vld [vmem:[#allocation8 + $0x1c8] sm:$0xff]  ;;  %v381_v3 = vld [vmem:[#allocation8 + $0x1f0] sm:$0xff] }
  0x26   :  { %164 = vmatpush.msra.mxu0 %v135_v14  ;;  %v378_v38 = vld [vmem:[#allocation8 + $0x1d8] sm:$0xff]  ;;  %v104_v41 = vld [vmem:[#allocation2 + $0x8] sm:$0xff]  ;;  %v105_v44 = vld [vmem:[#allocation2 + $0x10] sm:$0xff]  ;;  %454 = vmatpush.msra.mxu3 %v381_v3 }
  0x27   :  { %229 = vmatpush.msra.mxu1 %v136_v15  ;;  %v342_v42 = vld [vmem:[#allocation8 + $0xb8] sm:$0xff]  ;;  %v340_v45 = vld [vmem:[#allocation8 + $0xa8] sm:$0xff]  ;;  %v345_v4 = vld [vmem:[#allocation8 + $0xd0] sm:$0xff]  ;;  %390 = vmatpush.msra.mxu2 %v347_v2 }
  0x28   :  { %165 = vmatpush.msra.mxu0 %v133_v16  ;;  %v374_v43 = vld [vmem:[#allocation8 + $0x1b8] sm:$0xff]  ;;  %v372_v46 = vld [vmem:[#allocation8 + $0x1a8] sm:$0xff]  ;;  %v379_v5 = vld [vmem:[#allocation8 + $0x1e0] sm:$0xff] }
  0x29   :  { %230 = vmatpush.msra.mxu1 %v134_v17  ;;  %v338_v48 = vld [vmem:[#allocation8 + $0x98] sm:$0xff]  ;;  %v336_v51 = vld [vmem:[#allocation8 + $0x88] sm:$0xff]  ;;  %455 = vmatpush.msra.mxu3 %v379_v5  ;;  %v343_v7 = vld [vmem:[#allocation8 + $0xc0] sm:$0xff] }
  0x2a   :  { %166 = vmatpush.msra.mxu0 %v131_v18  ;;  %v370_v49 = vld [vmem:[#allocation8 + $0x198] sm:$0xff]  ;;  %v368_v52 = vld [vmem:[#allocation8 + $0x188] sm:$0xff]  ;;  %391 = vmatpush.msra.mxu2 %v345_v4  ;;  %v377_v8 = vld [vmem:[#allocation8 + $0x1d0] sm:$0xff] }
  0x2b   :  { %231 = vmatpush.msra.mxu1 %v132_v19  ;;  %v107_v50 = vld [vmem:[#allocation2 + $0x20] sm:$0xff]  ;;  %v108_v53 = vld [vmem:[#allocation2 + $0x28] sm:$0xff]  ;;  %v109_v56 = vld [vmem:[#allocation2 + $0x30] sm:$0xff]  ;;  %456 = vmatpush.msra.mxu3 %v377_v8 }
  0x2c   :  { %167 = vmatpush.msra.mxu0 %v129_v20  ;;  %v334_v54 = vld [vmem:[#allocation8 + $0x78] sm:$0xff]  ;;  %v332_v57 = vld [vmem:[#allocation8 + $0x68] sm:$0xff]  ;;  %392 = vmatpush.msra.mxu2 %v343_v7  ;;  %v341_v10 = vld [vmem:[#allocation8 + $0xb0] sm:$0xff] }
  0x2d   :  { %232 = vmatpush.msra.mxu1 %v130_v21  ;;  %v366_v55 = vld [vmem:[#allocation8 + $0x178] sm:$0xff]  ;;  %v364_v58 = vld [vmem:[#allocation8 + $0x168] sm:$0xff]  ;;  %v375_v11 = vld [vmem:[#allocation8 + $0x1c0] sm:$0xff] }
  0x2e   :  { %168 = vmatpush.msra.mxu0 %v127_v22  ;;  %v110_v59 = vld [vmem:[#allocation2 + $0x38] sm:$0xff]  ;;  %v111_v62 = vld [vmem:[#allocation2 + $0x40] sm:$0xff]  ;;  %v328_v63 = vld [vmem:[#allocation8 + $0x48] sm:$0xff]  ;;  %393 = vmatpush.msra.mxu2 %v341_v10 }
  0x2f   :  { %233 = vmatpush.msra.mxu1 %v128_v23  ;;  %v330_v60 = vld [vmem:[#allocation8 + $0x58] sm:$0xff]  ;;  %v360_v1 = vld [vmem:[#allocation8 + $0x148] sm:$0xff]  ;;  %v339_v13 = vld [vmem:[#allocation8 + $0xa0] sm:$0xff]  ;;  %457 = vmatpush.msra.mxu3 %v375_v11 }
  0x30   :  { %169 = vmatpush.msra.mxu0 %v125_v24  ;;  %v362_v61 = vld [vmem:[#allocation8 + $0x158] sm:$0xff]  ;;  %v112_v6 = vld [vmem:[#allocation2 + $0x48] sm:$0xff]  ;;  %v373_v14 = vld [vmem:[#allocation8 + $0x1b0] sm:$0xff]  ;;  %394 = vmatpush.msra.mxu2 %v339_v13 }
  0x31   :  { %234 = vmatpush.msra.mxu1 %v126_v25  ;;  %v326_v9 = vld [vmem:[#allocation8 + $0x38] sm:$0xff]  ;;  %v337_v15 = vld [vmem:[#allocation8 + $0x90] sm:$0xff]  ;;  %v371_v16 = vld [vmem:[#allocation8 + $0x1a0] sm:$0xff]  ;;  %458 = vmatpush.msra.mxu3 %v373_v14 }
  0x32   :  { %170 = vmatpush.msra.mxu0 %v123_v26  ;;  %v358_v12 = vld [vmem:[#allocation8 + $0x138] sm:$0xff]  ;;  %v113_v17 = vld [vmem:[#allocation2 + $0x50] sm:$0xff]  ;;  %395 = vmatpush.msra.mxu2 %v337_v15  ;;  %v335_v18 = vld [vmem:[#allocation8 + $0x80] sm:$0xff] }
  0x33   :  { %235 = vmatpush.msra.mxu1 %v124_v27  ;;  %459 = vmatpush.msra.mxu3 %v371_v16  ;;  %v369_v19 = vld [vmem:[#allocation8 + $0x190] sm:$0xff]  ;;  %v324_v20 = vld [vmem:[#allocation8 + $0x28] sm:$0xff]  ;;  %v367_v22 = vld [vmem:[#allocation8 + $0x180] sm:$0xff] }
  0x34   :  { %171 = vmatpush.msra.mxu0 %v121_v28  ;;  %396 = vmatpush.msra.mxu2 %v335_v18  ;;  %v333_v21 = vld [vmem:[#allocation8 + $0x70] sm:$0xff]  ;;  %v356_v23 = vld [vmem:[#allocation8 + $0x128] sm:$0xff]  ;;  %v331_v24 = vld [vmem:[#allocation8 + $0x60] sm:$0xff] }
  0x35   :  { %236 = vmatpush.msra.mxu1 %v122_v29  ;;  %460 = vmatpush.msra.mxu3 %v369_v19  ;;  %v365_v25 = vld [vmem:[#allocation8 + $0x170] sm:$0xff]  ;;  %v363_v27 = vld [vmem:[#allocation8 + $0x160] sm:$0xff]  ;;  %v692_v7 = vld [vmem:[#allocation10 + $0x58] sm:$0xff] }
  0x36   :  { %172 = vmatpush.msra.mxu0 %v119_v30  ;;  %397 = vmatpush.msra.mxu2 %v333_v21  ;;  %v329_v26 = vld [vmem:[#allocation8 + $0x50] sm:$0xff]  ;;  %v327_v29 = vld [vmem:[#allocation8 + $0x40] sm:$0xff] }
  0x37   :  { %237 = vmatpush.msra.mxu1 %v120_v31  ;;  %173 = vmatmul.f32.vlgmr.msra.gmra.mxu0 %v103_v32  ;;  %v114_v28 = vld [vmem:[#allocation2 + $0x58] sm:$0xff]  ;;  %v709_v4 = vld [vmem:[#allocation10 + $0xe0] sm:$0xff] }
  0x38   :  { %238 = vmatmul.f32.vlgmr.msra.gmra.mxu1 %v103_v32  ;;  %519 = vmatpush.msrb.mxu0 %v350_v33  ;;  %v361_v30 = vld [vmem:[#allocation8 + $0x150] sm:$0xff]  ;;  %v322_v31 = vld [vmem:[#allocation8 + $0x18] sm:$0xff]  ;;  %v359_v33 = vld [vmem:[#allocation8 + $0x140] sm:$0xff] }
  0x39   :  { %584 = vmatpush.msrb.mxu1 %v382_v34  ;;  %461 = vmatpush.msra.mxu3 %v367_v22  ;;  %v325_v32 = vld [vmem:[#allocation8 + $0x30] sm:$0xff]  ;;  %v354_v34 = vld [vmem:[#allocation8 + $0x118] sm:$0xff] }
  0x3a   :  { %520 = vmatpush.msrb.mxu0 %v348_v35  ;;  %398 = vmatpush.msra.mxu2 %v331_v24  ;;  %v323_v35 = vld [vmem:[#allocation8 + $0x20] sm:$0xff]  ;;  %v691_v15 = vld [vmem:[#allocation10 + $0x50] sm:$0xff] }
  0x3b   :  { %585 = vmatpush.msrb.mxu1 %v380_v36  ;;  %462 = vmatpush.msra.mxu3 %v365_v25  ;;  %v357_v36 = vld [vmem:[#allocation8 + $0x130] sm:$0xff] }
  0x3c   :  { %521 = vmatpush.msrb.mxu0 %v346_v37  ;;  %399 = vmatpush.msra.mxu2 %v329_v26  ;;  %v115_v37 = vld [vmem:[#allocation2 + $0x60] sm:$0xff] }
  0x3d   :  { %586 = vmatpush.msrb.mxu1 %v378_v38  ;;  %463 = vmatpush.msra.mxu3 %v363_v27  ;;  %v321_v38 = vld [vmem:[#allocation8 + $0x10] sm:$0xff] }
  0x3e   :  { %522 = vmatpush.msrb.mxu0 %v344_v39  ;;  %400 = vmatpush.msra.mxu2 %v327_v29  ;;  %v355_v39 = vld [vmem:[#allocation8 + $0x120] sm:$0xff] }
  0x3f   :  { %587 = vmatpush.msrb.mxu1 %v376_v40  ;;  %176 = vmatmul.f32.gmra.mxu0 %v104_v41  ;;  %v319_v40 = vld [vmem:[#allocation8] sm:$0xff] }
  0x40   :  { %241 = vmatmul.f32.gmra.mxu1 %v104_v41  ;;  %523 = vmatpush.msrb.mxu0 %v342_v42  ;;  %v353_v41 = vld [vmem:[#allocation8 + $0x110] sm:$0xff]  ;;  %v320_v42 = vld [vmem:[#allocation8 + $0x8] sm:$0xff] }
  0x41   :  { %588 = vmatpush.msrb.mxu1 %v374_v43  ;;  %464 = vmatpush.msra.mxu3 %v361_v30  ;;  %v351_v43 = vld [vmem:[#allocation8 + $0x100] sm:$0xff]  ;;  %v706_v30 = vld [vmem:[#allocation10 + $0xc8] sm:$0xff] }
  0x42   :  { %524 = vmatpush.msrb.mxu0 %v340_v45  ;;  %401 = vmatpush.msra.mxu2 %v325_v32  ;;  %v116_v45 = vld [vmem:[#allocation2 + $0x68] sm:$0xff] }
  0x43   :  { %589 = vmatpush.msrb.mxu1 %v372_v46  ;;  %465 = vmatpush.msra.mxu3 %v359_v33  ;;  %v696_v46 = vld [vmem:[#allocation10 + $0x78] sm:$0xff] }
  0x44   :  { %525 = vmatpush.msrb.mxu0 %v338_v48  ;;  %402 = vmatpush.msra.mxu2 %v323_v35  ;;  %v712_v48 = vld [vmem:[#allocation10 + $0xf8] sm:$0xff] }
  0x45   :  { %590 = vmatpush.msrb.mxu1 %v370_v49  ;;  %466 = vmatpush.msra.mxu3 %v357_v36  ;;  %v695_v49 = vld [vmem:[#allocation10 + $0x70] sm:$0xff] }
  0x46   :  { %526 = vmatpush.msrb.mxu0 %v336_v51  ;;  %403 = vmatpush.msra.mxu2 %v321_v38  ;;  %v711_v51 = vld [vmem:[#allocation10 + $0xf0] sm:$0xff]  ;;  %v705_v38 = vld [vmem:[#allocation10 + $0xc0] sm:$0xff] }
  0x47   :  { %179 = vmatmul.f32.gmra.mxu0 %v105_v44  ;;  %591 = vmatpush.msrb.mxu1 %v368_v52  ;;  %v151_v52 = vld [vmem:[#allocation7] sm:$0x3] }
  0x48   :  { %244 = vmatmul.f32.gmra.mxu1 %v105_v44  ;;  %527 = vmatpush.msrb.mxu0 %v334_v54  ;;  %v352_v44 = vld [vmem:[#allocation8 + $0x108] sm:$0xff]  ;;  %v1120_v54 = vperm.slane %v151_v52, 1 }
  0x49   :  { %592 = vmatpush.msrb.mxu1 %v366_v55  ;;  %467 = vmatpush.msra.mxu3 %v355_v39  ;;  %v694_v55 = vld [vmem:[#allocation10 + $0x68] sm:$0xff]  ;;  %v688_v39 = vld [vmem:[#allocation10 + $0x38] sm:$0xff] }
  0x4a   :  { %528 = vmatpush.msrb.mxu0 %v332_v57  ;;  %404 = vmatpush.msra.mxu2 %v319_v40 }
  0x4b   :  { %593 = vmatpush.msrb.mxu1 %v364_v58  ;;  %468 = vmatpush.msra.mxu3 %v353_v41 }
  0x4c   :  { %529 = vmatpush.msrb.mxu0 %v330_v60  ;;  %717 = vmatpush.msrb.mxu2 %v696_v46  ;;  %v710_v60 = vld [vmem:[#allocation10 + $0xe8] sm:$0xff]  ;;  %v704_v46 = vld [vmem:[#allocation10 + $0xb8] sm:$0xff] }
  0x4d   :  { %594 = vmatpush.msrb.mxu1 %v362_v61  ;;  %469 = vmatpush.msra.mxu3 %v351_v43 }
  0x4e   :  { %530 = vmatpush.msrb.mxu0 %v328_v63  ;;  %718 = vmatpush.msrb.mxu2 %v695_v49  ;;  %v693_v63 = vld [vmem:[#allocation10 + $0x60] sm:$0xff] }
  0x4f   :  { %182 = vmatmul.f32.gmra.mxu0 %v106_v47  ;;  %595 = vmatpush.msrb.mxu1 %v360_v1 }
  0x50   :  { %247 = vmatmul.f32.gmra.mxu1 %v106_v47  ;;  %531 = vmatpush.msrb.mxu0 %v326_v9  ;;  %v117_v47 = vld [vmem:[#allocation2 + $0x70] sm:$0xff] }
  0x51   :  { %596 = vmatpush.msrb.mxu1 %v358_v12  ;;  %782 = vmatpush.msrb.mxu3 %v712_v48  ;;  %v708_v12 = vld [vmem:[#allocation10 + $0xd8] sm:$0xff] }
  0x52   :  { %532 = vmatpush.msrb.mxu0 %v324_v20  ;;  %719 = vmatpush.msrb.mxu2 %v694_v55  ;;  %v707_v20 = vld [vmem:[#allocation10 + $0xd0] sm:$0xff] }
  0x53   :  { %597 = vmatpush.msrb.mxu1 %v356_v23  ;;  %783 = vmatpush.msrb.mxu3 %v711_v51  ;;  %v690_v23 = vld [vmem:[#allocation10 + $0x48] sm:$0xff] }
  0x54   :  { %533 = vmatpush.msrb.mxu0 %v322_v31  ;;  %720 = vmatpush.msrb.mxu2 %v693_v63  ;;  %v689_v31 = vld [vmem:[#allocation10 + $0x40] sm:$0xff] }
  0x55   :  { %598 = vmatpush.msrb.mxu1 %v354_v34  ;;  %784 = vmatpush.msrb.mxu3 %v710_v60 }
  0x56   :  { %534 = vmatpush.msrb.mxu0 %v320_v42  ;;  %721 = vmatpush.msrb.mxu2 %v692_v7 }
  0x57   :  { %185 = vmatmul.f32.gmra.mxu0 %v107_v50  ;;  %599 = vmatpush.msrb.mxu1 %v352_v44 }
  0x58   :  { %250 = vmatmul.f32.gmra.mxu1 %v107_v50  ;;  %v118_v50 = vld [vmem:[#allocation2 + $0x78] sm:$0xff]  ;;  %785 = vmatpush.msrb.mxu3 %v709_v4 }
  0x59   :  { %722 = vmatpush.msrb.mxu2 %v691_v15 }
  0x5a   :  { %786 = vmatpush.msrb.mxu3 %v708_v12 }
  0x5b   :  { %723 = vmatpush.msrb.mxu2 %v690_v23 }
  0x5c   :  { %787 = vmatpush.msrb.mxu3 %v707_v20 }
  0x5d   :  { %724 = vmatpush.msrb.mxu2 %v689_v31 }
  0x5e   :  { %788 = vmatpush.msrb.mxu3 %v706_v30 }
  0x5f   :  { %188 = vmatmul.f32.gmra.mxu0 %v108_v53  ;;  %725 = vmatpush.msrb.mxu2 %v688_v39 }
  0x60   :  { %253 = vmatmul.f32.gmra.mxu1 %v108_v53  ;;  %v1118_v53 = vperm.slane %v151_v52, 0  ;;  %789 = vmatpush.msrb.mxu3 %v705_v38 }
  0x62   :  { %790 = vmatpush.msrb.mxu3 %v704_v46 }
  0x67   :  { %191 = vmatmul.f32.gmra.mxu0 %v109_v56 }
  0x68   :  { %256 = vmatmul.f32.gmra.mxu1 %v109_v56 }
  0x6f   :  { %194 = vmatmul.f32.gmra.mxu0 %v110_v59 }
  0x70   :  { %259 = vmatmul.f32.gmra.mxu1 %v110_v59 }
  0x77   :  { %197 = vmatmul.f32.gmra.mxu0 %v111_v62 }
  0x78   :  { %262 = vmatmul.f32.gmra.mxu1 %v111_v62 }
  0x7f   :  { %200 = vmatmul.f32.gmra.mxu0 %v112_v6 }
  0x80   :  { %265 = vmatmul.f32.gmra.mxu1 %v112_v6 }
  0x87   :  { %203 = vmatmul.f32.gmra.mxu0 %v113_v17 }
  0x88   :  { %268 = vmatmul.f32.gmra.mxu1 %v113_v17 }
  0x8f   :  { %206 = vmatmul.f32.gmra.mxu0 %v114_v28 }
  0x90   :  { %271 = vmatmul.f32.gmra.mxu1 %v114_v28 }
  0x97   :  { %209 = vmatmul.f32.gmra.mxu0 %v115_v37 }
  0x98   :  { %274 = vmatmul.f32.gmra.mxu1 %v115_v37 }
  0x9f   :  { %212 = vmatmul.f32.gmra.mxu0 %v116_v45 }
  0xa0   :  { %277 = vmatmul.f32.gmra.mxu1 %v116_v45 }
  0xa7   :  { %215 = vmatmul.f32.gmra.mxu0 %v117_v47 }
  0xa8   :  { %280 = vmatmul.f32.gmra.mxu1 %v117_v47  ;;  %v687_v47 = vld [vmem:[#allocation10 + $0x30] sm:$0xff] }
  0xa9   :  { %726 = vmatpush.msrb.mxu2 %v687_v47 }
  0xaf   :  { %218 = vmatmul.f32.gmra.mxu0 %v118_v50 }
  0xb0   :  { %283 = vmatmul.f32.gmra.mxu1 %v118_v50 }
  0xb4   :  { %v174_v56 = vpop.f32.mrf.mxu0 }
  0xb5   :  { %v239_v57 = vpop.f32.mrf.mxu1  ;;  %v175_v58 = vadd.f32 %v174_v56, %v1118_v53  ;;  %v703_v56 = vld [vmem:[#allocation10 + $0xb0] sm:$0xff] }
  0xb6   :  { %v240_v59 = vadd.f32 %v239_v57, %v1120_v54  ;;  %791 = vmatpush.msrb.mxu3 %v703_v56  ;;  %v686_v57 = vld [vmem:[#allocation10 + $0x28] sm:$0xff] }
  0xb7   :  { %v287_v61 = vmax.f32 %v175_v58, 0.0  ;;  %727 = vmatpush.msrb.mxu2 %v686_v57 }
  0xb8   :  { %v288_v62 = vmax.f32 %v240_v59, 0.0 }
  0xb9   :  { %405 = vmatmul.f32.vlgmr.msra.gmra.mxu2 %v287_v61  ;;  %535 = vmatmul.f32.vlgmr.msrb.gmra.mxu0 %v287_v61 }
  0xba   :  { %470 = vmatmul.f32.vlgmr.msra.gmra.mxu3 %v288_v62  ;;  %600 = vmatmul.f32.vlgmr.msrb.gmra.mxu1 %v288_v62 }
  0xbc   :  { %v177_v0 = vpop.f32.mrf.mxu0 }
  0xbd   :  { %v242_v1 = vpop.f32.mrf.mxu1  ;;  %v178_v2 = vadd.f32 %v177_v0, %v1118_v53  ;;  %v702_v0 = vld [vmem:[#allocation10 + $0xa8] sm:$0xff] }
  0xbe   :  { %v243_v3 = vadd.f32 %v242_v1, %v1120_v54  ;;  %792 = vmatpush.msrb.mxu3 %v702_v0  ;;  %v685_v1 = vld [vmem:[#allocation10 + $0x20] sm:$0xff] }
  0xbf   :  { %v289_v5 = vmax.f32 %v178_v2, 0.0  ;;  %728 = vmatpush.msrb.mxu2 %v685_v1 }
  0xc0   :  { %v290_v6 = vmax.f32 %v243_v3, 0.0 }
  0xc1   :  { %408 = vmatmul.f32.gmra.mxu2 %v289_v5  ;;  %538 = vmatmul.f32.gmra.mxu0 %v289_v5 }
  0xc2   :  { %473 = vmatmul.f32.gmra.mxu3 %v290_v6  ;;  %603 = vmatmul.f32.gmra.mxu1 %v290_v6 }
  0xc4   :  { %v180_v8 = vpop.f32.mrf.mxu0 }
  0xc5   :  { %v245_v9 = vpop.f32.mrf.mxu1  ;;  %v181_v10 = vadd.f32 %v180_v8, %v1118_v53  ;;  %v701_v8 = vld [vmem:[#allocation10 + $0xa0] sm:$0xff] }
  0xc6   :  { %v246_v11 = vadd.f32 %v245_v9, %v1120_v54  ;;  %793 = vmatpush.msrb.mxu3 %v701_v8  ;;  %v684_v9 = vld [vmem:[#allocation10 + $0x18] sm:$0xff] }
  0xc7   :  { %v291_v13 = vmax.f32 %v181_v10, 0.0  ;;  %729 = vmatpush.msrb.mxu2 %v684_v9 }
  0xc8   :  { %v292_v14 = vmax.f32 %v246_v11, 0.0 }
  0xc9   :  { %411 = vmatmul.f32.gmra.mxu2 %v291_v13  ;;  %541 = vmatmul.f32.gmra.mxu0 %v291_v13 }
  0xca   :  { %476 = vmatmul.f32.gmra.mxu3 %v292_v14  ;;  %606 = vmatmul.f32.gmra.mxu1 %v292_v14 }
  0xcc   :  { %v183_v16 = vpop.f32.mrf.mxu0 }
  0xcd   :  { %v248_v17 = vpop.f32.mrf.mxu1  ;;  %v184_v18 = vadd.f32 %v183_v16, %v1118_v53  ;;  %v700_v16 = vld [vmem:[#allocation10 + $0x98] sm:$0xff] }
  0xce   :  { %v249_v19 = vadd.f32 %v248_v17, %v1120_v54  ;;  %794 = vmatpush.msrb.mxu3 %v700_v16  ;;  %v683_v17 = vld [vmem:[#allocation10 + $0x10] sm:$0xff] }
  0xcf   :  { %v293_v21 = vmax.f32 %v184_v18, 0.0  ;;  %730 = vmatpush.msrb.mxu2 %v683_v17 }
  0xd0   :  { %v294_v22 = vmax.f32 %v249_v19, 0.0 }
  0xd1   :  { %414 = vmatmul.f32.gmra.mxu2 %v293_v21  ;;  %544 = vmatmul.f32.gmra.mxu0 %v293_v21 }
  0xd2   :  { %479 = vmatmul.f32.gmra.mxu3 %v294_v22  ;;  %609 = vmatmul.f32.gmra.mxu1 %v294_v22 }
  0xd4   :  { %v186_v24 = vpop.f32.mrf.mxu0 }
  0xd5   :  { %v251_v25 = vpop.f32.mrf.mxu1  ;;  %v187_v26 = vadd.f32 %v186_v24, %v1118_v53  ;;  %v699_v24 = vld [vmem:[#allocation10 + $0x90] sm:$0xff] }
  0xd6   :  { %v252_v27 = vadd.f32 %v251_v25, %v1120_v54  ;;  %795 = vmatpush.msrb.mxu3 %v699_v24  ;;  %v682_v25 = vld [vmem:[#allocation10 + $0x8] sm:$0xff] }
  0xd7   :  { %v295_v28 = vmax.f32 %v187_v26, 0.0  ;;  %v698_v26 = vld [vmem:[#allocation10 + $0x88] sm:$0xff]  ;;  %731 = vmatpush.msrb.mxu2 %v682_v25 }
  0xd8   :  { %v296_v29 = vmax.f32 %v252_v27, 0.0  ;;  %796 = vmatpush.msrb.mxu3 %v698_v26 }
  0xd9   :  { %417 = vmatmul.f32.gmra.mxu2 %v295_v28  ;;  %547 = vmatmul.f32.gmra.mxu0 %v295_v28 }
  0xda   :  { %482 = vmatmul.f32.gmra.mxu3 %v296_v29  ;;  %612 = vmatmul.f32.gmra.mxu1 %v296_v29 }
  0xdc   :  { %v189_v32 = vpop.f32.mrf.mxu0 }
  0xdd   :  { %v254_v33 = vpop.f32.mrf.mxu1  ;;  %v190_v34 = vadd.f32 %v189_v32, %v1118_v53 }
  0xde   :  { %v255_v35 = vadd.f32 %v254_v33, %v1120_v54  ;;  %v681_v33 = vld [vmem:[#allocation10] sm:$0xff] }
  0xdf   :  { %v297_v36 = vmax.f32 %v190_v34, 0.0  ;;  %v697_v34 = vld [vmem:[#allocation10 + $0x80] sm:$0xff]  ;;  %732 = vmatpush.msrb.mxu2 %v681_v33 }
  0xe0   :  { %v298_v37 = vmax.f32 %v255_v35, 0.0  ;;  %797 = vmatpush.msrb.mxu3 %v697_v34 }
  0xe1   :  { %420 = vmatmul.f32.gmra.mxu2 %v297_v36  ;;  %550 = vmatmul.f32.gmra.mxu0 %v297_v36 }
  0xe2   :  { %485 = vmatmul.f32.gmra.mxu3 %v298_v37  ;;  %615 = vmatmul.f32.gmra.mxu1 %v298_v37 }
  0xe4   :  { %v192_v40 = vpop.f32.mrf.mxu0 }
  0xe5   :  { %v257_v41 = vpop.f32.mrf.mxu1  ;;  %v193_v42 = vadd.f32 %v192_v40, %v1118_v53 }
  0xe6   :  { %v258_v43 = vadd.f32 %v257_v41, %v1120_v54 }
  0xe7   :  { %v299_v44 = vmax.f32 %v193_v42, 0.0 }
  0xe8   :  { %v300_v45 = vmax.f32 %v258_v43, 0.0 }
  0xe9   :  { %423 = vmatmul.f32.gmra.mxu2 %v299_v44  ;;  %553 = vmatmul.f32.gmra.mxu0 %v299_v44 }
  0xea   :  { %488 = vmatmul.f32.gmra.mxu3 %v300_v45  ;;  %618 = vmatmul.f32.gmra.mxu1 %v300_v45 }
  0xec   :  { %v195_v48 = vpop.f32.mrf.mxu0 }
  0xed   :  { %v260_v49 = vpop.f32.mrf.mxu1  ;;  %v196_v50 = vadd.f32 %v195_v48, %v1118_v53 }
  0xee   :  { %v261_v51 = vadd.f32 %v260_v49, %v1120_v54 }
  0xef   :  { %v301_v52 = vmax.f32 %v196_v50, 0.0 }
  0xf0   :  { %v302_v55 = vmax.f32 %v261_v51, 0.0 }
  0xf1   :  { %426 = vmatmul.f32.gmra.mxu2 %v301_v52  ;;  %556 = vmatmul.f32.gmra.mxu0 %v301_v52 }
  0xf2   :  { %491 = vmatmul.f32.gmra.mxu3 %v302_v55  ;;  %621 = vmatmul.f32.gmra.mxu1 %v302_v55  ;;  %v383_v55 = vld [vmem:[%s1224_s4] sm:$0x3] }
  0xf3   :  { %v1157_v56 = vperm.slane %v383_v55, 1 }
  0xf4   :  { %v198_v58 = vpop.f32.mrf.mxu0 }
  0xf5   :  { %v263_v59 = vpop.f32.mrf.mxu1  ;;  %v199_v60 = vadd.f32 %v198_v58, %v1118_v53 }
  0xf6   :  { %v264_v61 = vadd.f32 %v263_v59, %v1120_v54 }
  0xf7   :  { %v303_v62 = vmax.f32 %v199_v60, 0.0 }
  0xf8   :  { %v304_v63 = vmax.f32 %v264_v61, 0.0 }
  0xf9   :  { %429 = vmatmul.f32.gmra.mxu2 %v303_v62  ;;  %559 = vmatmul.f32.gmra.mxu0 %v303_v62 }
  0xfa   :  { %494 = vmatmul.f32.gmra.mxu3 %v304_v63  ;;  %624 = vmatmul.f32.gmra.mxu1 %v304_v63 }
  0xfc   :  { %v201_v2 = vpop.f32.mrf.mxu0 }
  0xfd   :  { %v266_v3 = vpop.f32.mrf.mxu1  ;;  %v202_v4 = vadd.f32 %v201_v2, %v1118_v53 }
  0xfe   :  { %v267_v5 = vadd.f32 %v266_v3, %v1120_v54 }
  0xff   :  { %v305_v6 = vmax.f32 %v202_v4, 0.0 }
 0x100   :  { %v306_v7 = vmax.f32 %v267_v5, 0.0 }
 0x101   :  { %432 = vmatmul.f32.gmra.mxu2 %v305_v6  ;;  %562 = vmatmul.f32.gmra.mxu0 %v305_v6 }
 0x102   :  { %497 = vmatmul.f32.gmra.mxu3 %v306_v7  ;;  %627 = vmatmul.f32.gmra.mxu1 %v306_v7 }
 0x104   :  { %v204_v10 = vpop.f32.mrf.mxu0 }
 0x105   :  { %v269_v11 = vpop.f32.mrf.mxu1  ;;  %v205_v12 = vadd.f32 %v204_v10, %v1118_v53 }
 0x106   :  { %v270_v13 = vadd.f32 %v269_v11, %v1120_v54 }
 0x107   :  { %v307_v14 = vmax.f32 %v205_v12, 0.0 }
 0x108   :  { %v308_v15 = vmax.f32 %v270_v13, 0.0 }
 0x109   :  { %435 = vmatmul.f32.gmra.mxu2 %v307_v14  ;;  %565 = vmatmul.f32.gmra.mxu0 %v307_v14 }
 0x10a   :  { %500 = vmatmul.f32.gmra.mxu3 %v308_v15  ;;  %630 = vmatmul.f32.gmra.mxu1 %v308_v15 }
 0x10c   :  { %v207_v18 = vpop.f32.mrf.mxu0 }
 0x10d   :  { %v272_v19 = vpop.f32.mrf.mxu1  ;;  %v208_v20 = vadd.f32 %v207_v18, %v1118_v53 }
 0x10e   :  { %v273_v21 = vadd.f32 %v272_v19, %v1120_v54 }
 0x10f   :  { %v309_v22 = vmax.f32 %v208_v20, 0.0 }
 0x110   :  { %v310_v23 = vmax.f32 %v273_v21, 0.0 }
 0x111   :  { %438 = vmatmul.f32.gmra.mxu2 %v309_v22  ;;  %568 = vmatmul.f32.gmra.mxu0 %v309_v22 }
 0x112   :  { %503 = vmatmul.f32.gmra.mxu3 %v310_v23  ;;  %633 = vmatmul.f32.gmra.mxu1 %v310_v23 }
 0x114   :  { %v210_v27 = vpop.f32.mrf.mxu0 }
 0x115   :  { %v275_v28 = vpop.f32.mrf.mxu1  ;;  %v211_v29 = vadd.f32 %v210_v27, %v1118_v53 }
 0x116   :  { %v276_v30 = vadd.f32 %v275_v28, %v1120_v54 }
 0x117   :  { %v311_v31 = vmax.f32 %v211_v29, 0.0 }
 0x118   :  { %v312_v32 = vmax.f32 %v276_v30, 0.0 }
 0x119   :  { %441 = vmatmul.f32.gmra.mxu2 %v311_v31  ;;  %571 = vmatmul.f32.gmra.mxu0 %v311_v31 }
 0x11a   :  { %506 = vmatmul.f32.gmra.mxu3 %v312_v32  ;;  %636 = vmatmul.f32.gmra.mxu1 %v312_v32 }
 0x11c   :  { %v213_v35 = vpop.f32.mrf.mxu0 }
 0x11d   :  { %v278_v36 = vpop.f32.mrf.mxu1  ;;  %v214_v37 = vadd.f32 %v213_v35, %v1118_v53 }
 0x11e   :  { %v279_v38 = vadd.f32 %v278_v36, %v1120_v54 }
 0x11f   :  { %v313_v39 = vmax.f32 %v214_v37, 0.0 }
 0x120   :  { %v314_v40 = vmax.f32 %v279_v38, 0.0 }
 0x121   :  { %444 = vmatmul.f32.gmra.mxu2 %v313_v39  ;;  %574 = vmatmul.f32.gmra.mxu0 %v313_v39 }
 0x122   :  { %509 = vmatmul.f32.gmra.mxu3 %v314_v40  ;;  %639 = vmatmul.f32.gmra.mxu1 %v314_v40 }
 0x124   :  { %v216_v41 = vpop.f32.mrf.mxu0 }
 0x125   :  { %v281_v42 = vpop.f32.mrf.mxu1  ;;  %v217_v43 = vadd.f32 %v216_v41, %v1118_v53 }
 0x126   :  { %v282_v44 = vadd.f32 %v281_v42, %v1120_v54 }
 0x127   :  { %v315_v45 = vmax.f32 %v217_v43, 0.0 }
 0x128   :  { %v316_v46 = vmax.f32 %v282_v44, 0.0 }
 0x129   :  { %447 = vmatmul.f32.gmra.mxu2 %v315_v45  ;;  %577 = vmatmul.f32.gmra.mxu0 %v315_v45 }
 0x12a   :  { %512 = vmatmul.f32.gmra.mxu3 %v316_v46  ;;  %642 = vmatmul.f32.gmra.mxu1 %v316_v46 }
 0x12c   :  { %v219_v47 = vpop.f32.mrf.mxu0 }
 0x12d   :  { %v284_v48 = vpop.f32.mrf.mxu1  ;;  %v220_v49 = vadd.f32 %v219_v47, %v1118_v53  ;;  %v1160_v53 = vperm.slane %v383_v55, 0 }
 0x12e   :  { %v285_v50 = vadd.f32 %v284_v48, %v1120_v54 }
 0x12f   :  { %v317_v51 = vmax.f32 %v220_v49, 0.0 }
 0x130   :  { %v318_v52 = vmax.f32 %v285_v50, 0.0 }
 0x131   :  { %450 = vmatmul.f32.gmra.mxu2 %v317_v51  ;;  %580 = vmatmul.f32.gmra.mxu0 %v317_v51 }
 0x132   :  { %515 = vmatmul.f32.gmra.mxu3 %v318_v52  ;;  %645 = vmatmul.f32.gmra.mxu1 %v318_v52 }
 0x136   :  { %v536_v57 = vpop.f32.mrf.mxu0 }
 0x137   :  { %v537_v58 = vadd.f32 %v536_v57, %v1157_v56  ;;  %v601_v59 = vpop.f32.mrf.mxu1 }
 0x139   :  { %v602_v60 = vadd.f32 %v601_v59, %v537_v58 }
 0x13b   :  { %v650_v54 = vmax.f32 %v602_v60, 0.0 }
 0x13c   :  { %v406_v61 = vpop.f32.mrf.mxu2 }
 0x13d   :  { %v407_v62 = vadd.f32 %v406_v61, %v1160_v53  ;;  %798 = vmatmul.f32.vlgmr.msrb.gmra.mxu3 %v650_v54  ;;  %v471_v63 = vpop.f32.mrf.mxu3 }
 0x13e   :  { %v539_v0 = vpop.f32.mrf.mxu0 }
 0x13f   :  { %v472_v1 = vadd.f32 %v471_v63, %v407_v62  ;;  %v540_v2 = vadd.f32 %v539_v0, %v1157_v56  ;;  %v604_v3 = vpop.f32.mrf.mxu1 }
 0x141   :  { %v649_v4 = vmax.f32 %v472_v1, 0.0  ;;  %v605_v5 = vadd.f32 %v604_v3, %v540_v2 }
 0x143   :  { %v652_v6 = vmax.f32 %v605_v5, 0.0  ;;  %733 = vmatmul.f32.vlgmr.msrb.gmra.mxu2 %v649_v4 }
 0x144   :  { %v409_v7 = vpop.f32.mrf.mxu2 }
 0x145   :  { %v410_v8 = vadd.f32 %v409_v7, %v1160_v53  ;;  %801 = vmatmul.f32.gmra.mxu3 %v652_v6  ;;  %v474_v9 = vpop.f32.mrf.mxu3 }
 0x146   :  { %v542_v10 = vpop.f32.mrf.mxu0 }
 0x147   :  { %v475_v11 = vadd.f32 %v474_v9, %v410_v8  ;;  %v543_v12 = vadd.f32 %v542_v10, %v1157_v56  ;;  %v607_v13 = vpop.f32.mrf.mxu1 }
 0x149   :  { %v608_v14 = vadd.f32 %v607_v13, %v543_v12  ;;  %v651_v15 = vmax.f32 %v475_v11, 0.0 }
 0x14b   :  { %v654_v16 = vmax.f32 %v608_v14, 0.0  ;;  %736 = vmatmul.f32.gmra.mxu2 %v651_v15 }
 0x14c   :  { %v412_v17 = vpop.f32.mrf.mxu2 }
 0x14d   :  { %v413_v18 = vadd.f32 %v412_v17, %v1160_v53  ;;  %804 = vmatmul.f32.gmra.mxu3 %v654_v16  ;;  %v477_v19 = vpop.f32.mrf.mxu3 }
 0x14e   :  { %v545_v20 = vpop.f32.mrf.mxu0 }
 0x14f   :  { %v478_v21 = vadd.f32 %v477_v19, %v413_v18  ;;  %v546_v22 = vadd.f32 %v545_v20, %v1157_v56  ;;  %v610_v23 = vpop.f32.mrf.mxu1 }
 0x151   :  { %v611_v24 = vadd.f32 %v610_v23, %v546_v22  ;;  %v653_v25 = vmax.f32 %v478_v21, 0.0 }
 0x153   :  { %v656_v26 = vmax.f32 %v611_v24, 0.0  ;;  %739 = vmatmul.f32.gmra.mxu2 %v653_v25 }
 0x154   :  { %v415_v27 = vpop.f32.mrf.mxu2 }
 0x155   :  { %v416_v28 = vadd.f32 %v415_v27, %v1160_v53  ;;  %807 = vmatmul.f32.gmra.mxu3 %v656_v26  ;;  %v480_v29 = vpop.f32.mrf.mxu3 }
 0x156   :  { %v548_v30 = vpop.f32.mrf.mxu0 }
 0x157   :  { %v481_v31 = vadd.f32 %v480_v29, %v416_v28  ;;  %v549_v32 = vadd.f32 %v548_v30, %v1157_v56  ;;  %v613_v33 = vpop.f32.mrf.mxu1 }
 0x159   :  { %v614_v34 = vadd.f32 %v613_v33, %v549_v32  ;;  %v655_v35 = vmax.f32 %v481_v31, 0.0 }
 0x15b   :  { %v658_v36 = vmax.f32 %v614_v34, 0.0  ;;  %742 = vmatmul.f32.gmra.mxu2 %v655_v35 }
 0x15c   :  { %v418_v37 = vpop.f32.mrf.mxu2 }
 0x15d   :  { %v419_v38 = vadd.f32 %v418_v37, %v1160_v53  ;;  %810 = vmatmul.f32.gmra.mxu3 %v658_v36  ;;  %v483_v39 = vpop.f32.mrf.mxu3 }
 0x15e   :  { %v551_v40 = vpop.f32.mrf.mxu0 }
 0x15f   :  { %v484_v41 = vadd.f32 %v483_v39, %v419_v38  ;;  %v552_v42 = vadd.f32 %v551_v40, %v1157_v56  ;;  %v616_v43 = vpop.f32.mrf.mxu1 }
 0x161   :  { %v617_v44 = vadd.f32 %v616_v43, %v552_v42  ;;  %v657_v45 = vmax.f32 %v484_v41, 0.0 }
 0x163   :  { %v660_v46 = vmax.f32 %v617_v44, 0.0  ;;  %745 = vmatmul.f32.gmra.mxu2 %v657_v45 }
 0x164   :  { %v421_v47 = vpop.f32.mrf.mxu2 }
 0x165   :  { %v422_v48 = vadd.f32 %v421_v47, %v1160_v53  ;;  %813 = vmatmul.f32.gmra.mxu3 %v660_v46  ;;  %v486_v49 = vpop.f32.mrf.mxu3 }
 0x166   :  { %v554_v50 = vpop.f32.mrf.mxu0 }
 0x167   :  { %v487_v51 = vadd.f32 %v486_v49, %v422_v48  ;;  %v555_v52 = vadd.f32 %v554_v50, %v1157_v56  ;;  %v619_v55 = vpop.f32.mrf.mxu1 }
 0x169   :  { %v620_v57 = vadd.f32 %v619_v55, %v555_v52  ;;  %v659_v58 = vmax.f32 %v487_v51, 0.0 }
 0x16b   :  { %v662_v59 = vmax.f32 %v620_v57, 0.0  ;;  %748 = vmatmul.f32.gmra.mxu2 %v659_v58 }
 0x16c   :  { %v424_v60 = vpop.f32.mrf.mxu2 }
 0x16d   :  { %v425_v54 = vadd.f32 %v424_v60, %v1160_v53  ;;  %816 = vmatmul.f32.gmra.mxu3 %v662_v59  ;;  %v489_v61 = vpop.f32.mrf.mxu3 }
 0x16e   :  { %v557_v62 = vpop.f32.mrf.mxu0 }
 0x16f   :  { %v490_v63 = vadd.f32 %v489_v61, %v425_v54  ;;  %v558_v0 = vadd.f32 %v557_v62, %v1157_v56  ;;  %v622_v1 = vpop.f32.mrf.mxu1 }
 0x171   :  { %v623_v2 = vadd.f32 %v622_v1, %v558_v0  ;;  %v661_v3 = vmax.f32 %v490_v63, 0.0 }
 0x173   :  { %v664_v4 = vmax.f32 %v623_v2, 0.0  ;;  %751 = vmatmul.f32.gmra.mxu2 %v661_v3 }
 0x174   :  { %v427_v5 = vpop.f32.mrf.mxu2 }
 0x175   :  { %v428_v6 = vadd.f32 %v427_v5, %v1160_v53  ;;  %819 = vmatmul.f32.gmra.mxu3 %v664_v4  ;;  %v492_v7 = vpop.f32.mrf.mxu3 }
 0x176   :  { %v560_v8 = vpop.f32.mrf.mxu0 }
 0x177   :  { %v493_v9 = vadd.f32 %v492_v7, %v428_v6  ;;  %v561_v10 = vadd.f32 %v560_v8, %v1157_v56  ;;  %v625_v11 = vpop.f32.mrf.mxu1 }
 0x179   :  { %v626_v12 = vadd.f32 %v625_v11, %v561_v10  ;;  %v663_v13 = vmax.f32 %v493_v9, 0.0 }
 0x17b   :  { %v666_v14 = vmax.f32 %v626_v12, 0.0  ;;  %754 = vmatmul.f32.gmra.mxu2 %v663_v13 }
 0x17c   :  { %v430_v15 = vpop.f32.mrf.mxu2 }
 0x17d   :  { %v431_v16 = vadd.f32 %v430_v15, %v1160_v53  ;;  %822 = vmatmul.f32.gmra.mxu3 %v666_v14  ;;  %v495_v17 = vpop.f32.mrf.mxu3 }
 0x17e   :  { %v563_v18 = vpop.f32.mrf.mxu0 }
 0x17f   :  { %v496_v19 = vadd.f32 %v495_v17, %v431_v16  ;;  %v564_v20 = vadd.f32 %v563_v18, %v1157_v56  ;;  %v628_v21 = vpop.f32.mrf.mxu1 }
 0x181   :  { %v665_v22 = vmax.f32 %v496_v19, 0.0  ;;  %v629_v23 = vadd.f32 %v628_v21, %v564_v20 }
 0x183   :  { %v668_v24 = vmax.f32 %v629_v23, 0.0  ;;  %757 = vmatmul.f32.gmra.mxu2 %v665_v22 }
 0x184   :  { %v433_v25 = vpop.f32.mrf.mxu2 }
 0x185   :  { %v434_v26 = vadd.f32 %v433_v25, %v1160_v53  ;;  %825 = vmatmul.f32.gmra.mxu3 %v668_v24  ;;  %v498_v27 = vpop.f32.mrf.mxu3 }
 0x186   :  { %v566_v28 = vpop.f32.mrf.mxu0 }
 0x187   :  { %v499_v29 = vadd.f32 %v498_v27, %v434_v26  ;;  %v567_v30 = vadd.f32 %v566_v28, %v1157_v56  ;;  %v631_v31 = vpop.f32.mrf.mxu1 }
 0x189   :  { %v667_v32 = vmax.f32 %v499_v29, 0.0  ;;  %v632_v33 = vadd.f32 %v631_v31, %v567_v30  ;;  %v1196_v29 = vld [vmem:[%s1226_s6] ss:$0 sm:$0xff]  ;;  %s1056_s6 = smov [#allocation11]  }
 0x18a   :  { %s867_s28 = sshll.u32 %s1056_s6, 4  ;;  %s868_s28 = int_to_ptr.vmem [resolvable:$true] %s867_s28 }
 0x18b   :  { %v670_v34 = vmax.f32 %v632_v33, 0.0  ;;  %760 = vmatmul.f32.gmra.mxu2 %v667_v32 }
 0x18c   :  { %v436_v35 = vpop.f32.mrf.mxu2 }
 0x18d   :  { %v437_v36 = vadd.f32 %v436_v35, %v1160_v53  ;;  %828 = vmatmul.f32.gmra.mxu3 %v670_v34  ;;  %v501_v37 = vpop.f32.mrf.mxu3 }
 0x18e   :  { %v569_v38 = vpop.f32.mrf.mxu0 }
 0x18f   :  { %v502_v39 = vadd.f32 %v501_v37, %v437_v36  ;;  %v570_v40 = vadd.f32 %v569_v38, %v1157_v56  ;;  %v634_v41 = vpop.f32.mrf.mxu1 }
 0x191   :  { %v669_v42 = vmax.f32 %v502_v39, 0.0  ;;  %v635_v43 = vadd.f32 %v634_v41, %v570_v40 }
 0x193   :  { %v672_v44 = vmax.f32 %v635_v43, 0.0  ;;  %763 = vmatmul.f32.gmra.mxu2 %v669_v42 }
 0x194   :  { %v439_v45 = vpop.f32.mrf.mxu2 }
 0x195   :  { %v440_v46 = vadd.f32 %v439_v45, %v1160_v53  ;;  %831 = vmatmul.f32.gmra.mxu3 %v672_v44  ;;  %v504_v47 = vpop.f32.mrf.mxu3 }
 0x196   :  { %v572_v48 = vpop.f32.mrf.mxu0 }
 0x197   :  { %v505_v49 = vadd.f32 %v504_v47, %v440_v46  ;;  %v573_v50 = vadd.f32 %v572_v48, %v1157_v56  ;;  %v637_v51 = vpop.f32.mrf.mxu1 }
 0x199   :  { %v671_v52 = vmax.f32 %v505_v49, 0.0  ;;  %v638_v55 = vadd.f32 %v637_v51, %v573_v50 }
 0x19b   :  { %v674_v57 = vmax.f32 %v638_v55, 0.0  ;;  %766 = vmatmul.f32.gmra.mxu2 %v671_v52 }
 0x19c   :  { %v442_v58 = vpop.f32.mrf.mxu2 }
 0x19d   :  { %v443_v59 = vadd.f32 %v442_v58, %v1160_v53  ;;  %834 = vmatmul.f32.gmra.mxu3 %v674_v57  ;;  %v507_v60 = vpop.f32.mrf.mxu3 }
 0x19e   :  { %v575_v54 = vpop.f32.mrf.mxu0 }
 0x19f   :  { %v508_v61 = vadd.f32 %v507_v60, %v443_v59  ;;  %v576_v62 = vadd.f32 %v575_v54, %v1157_v56  ;;  %v640_v63 = vpop.f32.mrf.mxu1 }
 0x1a1   :  { %v673_v0 = vmax.f32 %v508_v61, 0.0  ;;  %v641_v1 = vadd.f32 %v640_v63, %v576_v62 }
 0x1a3   :  { %v676_v2 = vmax.f32 %v641_v1, 0.0  ;;  %769 = vmatmul.f32.gmra.mxu2 %v673_v0 }
 0x1a4   :  { %v445_v3 = vpop.f32.mrf.mxu2 }
 0x1a5   :  { %v446_v4 = vadd.f32 %v445_v3, %v1160_v53  ;;  %837 = vmatmul.f32.gmra.mxu3 %v676_v2  ;;  %v510_v5 = vpop.f32.mrf.mxu3 }
 0x1a6   :  { %v578_v6 = vpop.f32.mrf.mxu0 }
 0x1a7   :  { %v511_v7 = vadd.f32 %v510_v5, %v446_v4  ;;  %v579_v8 = vadd.f32 %v578_v6, %v1157_v56  ;;  %v643_v9 = vpop.f32.mrf.mxu1 }
 0x1a9   :  { %v675_v10 = vmax.f32 %v511_v7, 0.0  ;;  %v644_v11 = vadd.f32 %v643_v9, %v579_v8 }
 0x1ab   :  { %v678_v12 = vmax.f32 %v644_v11, 0.0  ;;  %772 = vmatmul.f32.gmra.mxu2 %v675_v10 }
 0x1ac   :  { %v448_v13 = vpop.f32.mrf.mxu2 }
 0x1ad   :  { %v449_v14 = vadd.f32 %v448_v13, %v1160_v53  ;;  %840 = vmatmul.f32.gmra.mxu3 %v678_v12  ;;  %v513_v15 = vpop.f32.mrf.mxu3 }
 0x1ae   :  { %v581_v16 = vpop.f32.mrf.mxu0 }
 0x1af   :  { %v514_v17 = vadd.f32 %v513_v15, %v449_v14  ;;  %v582_v18 = vadd.f32 %v581_v16, %v1157_v56  ;;  %v646_v19 = vpop.f32.mrf.mxu1 }
 0x1b1   :  { %v677_v20 = vmax.f32 %v514_v17, 0.0  ;;  %v647_v21 = vadd.f32 %v646_v19, %v582_v18 }
 0x1b3   :  { %v680_v22 = vmax.f32 %v647_v21, 0.0  ;;  %775 = vmatmul.f32.gmra.mxu2 %v677_v20 }
 0x1b4   :  { %v451_v23 = vpop.f32.mrf.mxu2 }
 0x1b5   :  { %v452_v24 = vadd.f32 %v451_v23, %v1160_v53  ;;  %843 = vmatmul.f32.gmra.mxu3 %v680_v22  ;;  %v516_v25 = vpop.f32.mrf.mxu3 }
 0x1b7   :  { %v517_v26 = vadd.f32 %v516_v25, %v452_v24 }
 0x1b9   :  { %v679_v27 = vmax.f32 %v517_v26, 0.0 }
 0x1bb   :  { %778 = vmatmul.f32.gmra.mxu2 %v679_v27 }
 0x1c0   :  { %v799_v28 = vpop.f32.mrf.mxu3 }
 0x1c6   :  { %v734_v56 = vpop.f32.mrf.mxu2 }
 0x1c7   :  { %v735_v30 = vadd.f32 %v1196_v29, %v734_v56 }
 0x1c8   :  { %v802_v31 = vpop.f32.mrf.mxu3 }
 0x1c9   :  { %v800_v32 = vadd.f32 %v799_v28, %v735_v30 }
 0x1cb   :  { %847 = vst [vmem:[#allocation11] sm:$0xff] %v800_v32 }
 0x1ce   :  { %v737_v33 = vpop.f32.mrf.mxu2 }
 0x1cf   :  { %v738_v53 = vadd.f32 %v1196_v29, %v737_v33 }
 0x1d0   :  { %v805_v34 = vpop.f32.mrf.mxu3 }
 0x1d1   :  { %v803_v35 = vadd.f32 %v802_v31, %v738_v53 }
 0x1d3   :  { %848 = vst [vmem:[#allocation11 + $0x8] sm:$0xff] %v803_v35 }
 0x1d6   :  { %v740_v36 = vpop.f32.mrf.mxu2 }
 0x1d7   :  { %v741_v37 = vadd.f32 %v1196_v29, %v740_v36 }
 0x1d8   :  { %v808_v38 = vpop.f32.mrf.mxu3 }
 0x1d9   :  { %v806_v39 = vadd.f32 %v805_v34, %v741_v37 }
 0x1db   :  { %849 = vst [vmem:[#allocation11 + $0x10] sm:$0xff] %v806_v39 }
 0x1de   :  { %v743_v40 = vpop.f32.mrf.mxu2 }
 0x1df   :  { %v744_v41 = vadd.f32 %v1196_v29, %v743_v40 }
 0x1e0   :  { %v811_v42 = vpop.f32.mrf.mxu3 }
 0x1e1   :  { %v809_v43 = vadd.f32 %v808_v38, %v744_v41 }
 0x1e3   :  { %850 = vst [vmem:[#allocation11 + $0x18] sm:$0xff] %v809_v43 }
 0x1e6   :  { %v746_v44 = vpop.f32.mrf.mxu2 }
 0x1e7   :  { %v747_v45 = vadd.f32 %v1196_v29, %v746_v44 }
 0x1e8   :  { %v814_v46 = vpop.f32.mrf.mxu3 }
 0x1e9   :  { %v812_v47 = vadd.f32 %v811_v42, %v747_v45 }
 0x1eb   :  { %851 = vst [vmem:[#allocation11 + $0x20] sm:$0xff] %v812_v47 }
 0x1ee   :  { %v749_v48 = vpop.f32.mrf.mxu2 }
 0x1ef   :  { %v750_v49 = vadd.f32 %v1196_v29, %v749_v48 }
 0x1f0   :  { %v817_v50 = vpop.f32.mrf.mxu3 }
 0x1f1   :  { %v815_v51 = vadd.f32 %v814_v46, %v750_v49 }
 0x1f3   :  { %852 = vst [vmem:[#allocation11 + $0x28] sm:$0xff] %v815_v51 }
 0x1f6   :  { %v752_v52 = vpop.f32.mrf.mxu2 }
 0x1f7   :  { %v753_v55 = vadd.f32 %v1196_v29, %v752_v52 }
 0x1f8   :  { %v820_v57 = vpop.f32.mrf.mxu3 }
 0x1f9   :  { %v818_v58 = vadd.f32 %v817_v50, %v753_v55 }
 0x1fb   :  { %853 = vst [vmem:[#allocation11 + $0x30] sm:$0xff] %v818_v58 }
 0x1fe   :  { %v755_v59 = vpop.f32.mrf.mxu2 }
 0x1ff   :  { %v756_v60 = vadd.f32 %v1196_v29, %v755_v59 }
 0x200   :  { %v823_v54 = vpop.f32.mrf.mxu3 }
 0x201   :  { %v821_v61 = vadd.f32 %v820_v57, %v756_v60 }
 0x203   :  { %854 = vst [vmem:[#allocation11 + $0x38] sm:$0xff] %v821_v61 }
 0x206   :  { %v758_v62 = vpop.f32.mrf.mxu2 }
 0x207   :  { %v759_v63 = vadd.f32 %v1196_v29, %v758_v62 }
 0x208   :  { %v826_v0 = vpop.f32.mrf.mxu3 }
 0x209   :  { %v824_v1 = vadd.f32 %v823_v54, %v759_v63 }
 0x20b   :  { %855 = vst [vmem:[#allocation11 + $0x40] sm:$0xff] %v824_v1 }
 0x20e   :  { %v761_v2 = vpop.f32.mrf.mxu2 }
 0x20f   :  { %v762_v3 = vadd.f32 %v1196_v29, %v761_v2 }
 0x210   :  { %v829_v4 = vpop.f32.mrf.mxu3 }
 0x211   :  { %v827_v5 = vadd.f32 %v826_v0, %v762_v3 }
 0x213   :  { %856 = vst [vmem:[#allocation11 + $0x48] sm:$0xff] %v827_v5 }
 0x216   :  { %v764_v6 = vpop.f32.mrf.mxu2 }
 0x217   :  { %v765_v7 = vadd.f32 %v1196_v29, %v764_v6 }
 0x218   :  { %v832_v8 = vpop.f32.mrf.mxu3 }
 0x219   :  { %v830_v9 = vadd.f32 %v829_v4, %v765_v7 }
 0x21b   :  { %857 = vst [vmem:[#allocation11 + $0x50] sm:$0xff] %v830_v9 }
 0x21e   :  { %v767_v10 = vpop.f32.mrf.mxu2 }
 0x21f   :  { %v768_v11 = vadd.f32 %v1196_v29, %v767_v10 }
 0x220   :  { %v835_v13 = vpop.f32.mrf.mxu3 }
 0x221   :  { %v833_v12 = vadd.f32 %v832_v8, %v768_v11 }
 0x223   :  { %858 = vst [vmem:[#allocation11 + $0x58] sm:$0xff] %v833_v12 }
 0x226   :  { %v770_v14 = vpop.f32.mrf.mxu2 }
 0x227   :  { %v771_v15 = vadd.f32 %v1196_v29, %v770_v14 }
 0x228   :  { %v838_v17 = vpop.f32.mrf.mxu3 }
 0x229   :  { %v836_v16 = vadd.f32 %v835_v13, %v771_v15 }
 0x22b   :  { %859 = vst [vmem:[#allocation11 + $0x60] sm:$0xff] %v836_v16 }
 0x22e   :  { %v773_v18 = vpop.f32.mrf.mxu2 }
 0x22f   :  { %v774_v19 = vadd.f32 %v1196_v29, %v773_v18 }
 0x230   :  { %v841_v21 = vpop.f32.mrf.mxu3 }
 0x231   :  { %v839_v20 = vadd.f32 %v838_v17, %v774_v19 }
 0x233   :  { %860 = vst [vmem:[#allocation11 + $0x68] sm:$0xff] %v839_v20 }
 0x236   :  { %v776_v22 = vpop.f32.mrf.mxu2 }
 0x237   :  { %v777_v23 = vadd.f32 %v1196_v29, %v776_v22 }
 0x238   :  { %v844_v27 = vpop.f32.mrf.mxu3 }
 0x239   :  { %v842_v24 = vadd.f32 %v841_v21, %v777_v23 }
 0x23b   :  { %861 = vst [vmem:[#allocation11 + $0x70] sm:$0xff] %v842_v24 }
 0x23e   :  { %v779_v25 = vpop.f32.mrf.mxu2 }
 0x23f   :  { %v780_v26 = vadd.f32 %v1196_v29, %v779_v25 }
 0x241   :  { %v845_v28 = vadd.f32 %v844_v27, %v780_v26 }
 0x243   :  { %862 = vst [vmem:[#allocation11 + $0x78] sm:$0xff] %v845_v28 }
 0x244   :  { %875 = dma.vmem_to_hbm [thread:$0]  %s868_s28, 2048, %s870_s8, [#allocation4], %s1052_s19, %s1052_s19, %s1053_s20  }
 0x245   :  { %1045 = dma.done.wait [#allocation4], 2048  }
 0x246   :  { %1046 = vsyncadd [#allocation4], 4294965248 }
 0x247   :  { %880 = vsyncpa [#allocation3], 1 }
 0x248   :  { %881 = vsyncpa [#allocation6], 1 }
 0x249   :  { %882 = vsyncpa [#allocation9], 1 }
 0x24a   :  { %883 = vsyncpa [#allocation4], 1 }

</bundles_post_ra>
